<compile_context>
chip_gen: v7x
topology: tpu7x:2x2x1
jax: 0.10.0
libtpu: 0.0.40
codegen_flags: <defaults>
</compile_context>

<pallas_src>
import functools

import jax
import jax.numpy as jnp
from jax.experimental import pallas as pl
from jax.experimental.pallas import tpu as pltpu


_LANE = 128


def _round_up(x, m):
    return ((x + m - 1) // m) * m


def _vmem_limit_bytes():
    """Generation-aware scoped-VMEM limit (32 MiB on v7x, 64 MiB on v5e/v6e)."""
    try:
        phys = int(pltpu.get_tpu_info().vmem_capacity_bytes)
    except Exception:
        phys = 64 * 1024 * 1024  # v7x has the smallest per-core VMEM
    return min(phys // 2, 64 * 1024 * 1024)


def _choose_hw_tile(hw, c, itemsize, out_mult, n, vmem_limit):
    """Lane-dense tile over flattened HW, capped and sized to the VMEM budget."""
    if hw <= _LANE:
        return hw  # full dim -> always legal
    c_pad = _round_up(c, 8)
    # Per 128-lane column: double-buffered input + output tiles plus ~2
    # tile-sized f32 intermediates live inside the kernel body.
    per_unit = _LANE * c_pad * (2 * (1 + out_mult) * itemsize + 2 * 4)
    # Leave 40% of the scoped limit (and the resident weight/bias) as headroom.
    budget = int(vmem_limit * 0.6) - 2 * (c_pad * c_pad + c_pad) * 4
    units_vmem = max(1, budget // per_unit)
    units_cap = 2048 // _LANE        # 512-2048 lanes already ~saturate HBM BW
    units = int(max(1, min(units_vmem, units_cap, hw // _LANE)))
    # Prefer >= 8 total grid steps (2 TensorCores x pipeline depth) when there
    # is enough work, but never shrink below ~512 lanes.
    while units > 4 and n * pl.cdiv(pl.cdiv(hw, _LANE), units) < 8:
        units = max(4, units // 2)
    return units * _LANE


# ---------------------------------------------------------------------------
# Kernel
# ---------------------------------------------------------------------------

def _skip_kernel(x_ref, w_ref, b_ref, o_ref, *, mode: str):
    """SkipConnection tile: y = 1x1conv(x); combine(x, y).

    x_ref : (1, C, hw_tile)      input tile (original dtype)
    w_ref : (C, C) f32           1x1 conv weight (out_ch, in_ch)
    b_ref : (C, 1) f32           conv bias
    o_ref : (1, 2, C, hw_tile) for "cat", (1, C, hw_tile) for "add"/"mul"
    """
    x = x_ref[0]                                  # (C, hw_tile)
    xf = x.astype(jnp.float32)
    # 1x1 conv == channel-mixing matmul on the MXU, f32 accumulate.
    y = jnp.dot(w_ref[...], xf, preferred_element_type=jnp.float32) + b_ref[...]

    if mode == "cat":
        o_ref[0, 0, :, :] = x
        o_ref[0, 1, :, :] = y.astype(o_ref.dtype)
    elif mode == "add":
        o_ref[0, :, :] = (xf + y).astype(o_ref.dtype)
    else:  # "mul"
        o_ref[0, :, :] = (xf * y).astype(o_ref.dtype)


# ---------------------------------------------------------------------------
# Wrapper
# ---------------------------------------------------------------------------

def skip_connection(x, weight, bias, *, mode: str = "cat"):
    """SkipConnection forward: combine x with submodule(x) (1x1 conv).

    x      : (N, C, H, W) NCHW
    weight : (C, C)  1x1 conv weight
    bias   : (C,)    conv bias
    """
    if mode not in ("cat", "add", "mul"):
        raise NotImplementedError(f"Unsupported mode {mode}.")

    n, c, h, w_sp = x.shape
    hw = h * w_sp
    out_mult = 2 if mode == "cat" else 1
    itemsize = jnp.dtype(x.dtype).itemsize

    vmem_limit = _vmem_limit_bytes()
    hw_tile = _choose_hw_tile(hw, c, itemsize, out_mult, n, vmem_limit)
    grid = (n, pl.cdiv(hw, hw_tile))              # boundary block masked by Pallas

    x_flat = x.reshape(n, c, hw)                  # contiguous view, free
    w_mat = weight.astype(jnp.float32)
    b_col = bias.reshape(c, 1).astype(jnp.float32)

    x_spec = pl.BlockSpec((1, c, hw_tile), lambda bi, j: (bi, 0, j))
    w_spec = pl.BlockSpec((c, c), lambda bi, j: (0, 0))
    b_spec = pl.BlockSpec((c, 1), lambda bi, j: (0, 0))

    if mode == "cat":
        out_shape = jax.ShapeDtypeStruct((n, 2, c, hw), x.dtype)
        out_spec = pl.BlockSpec((1, 2, c, hw_tile), lambda bi, j: (bi, 0, 0, j))
    else:
        out_shape = jax.ShapeDtypeStruct((n, c, hw), x.dtype)
        out_spec = pl.BlockSpec((1, c, hw_tile), lambda bi, j: (bi, 0, j))

    out = pl.pallas_call(
        functools.partial(_skip_kernel, mode=mode),
        out_shape=out_shape,
        grid=grid,
        in_specs=[x_spec, w_spec, b_spec],
        out_specs=out_spec,
        compiler_params=pltpu.CompilerParams(
            dimension_semantics=("parallel", "parallel"),
            vmem_limit_bytes=vmem_limit,
        ),
    )(x_flat, w_mat, b_col)

    # TODO(synk): for "add"/"mul" with a donated input, input_output_aliases={0: 0}
    # could reuse x's HBM buffer; skipped so non-donating callers never pay a copy.

    if mode == "cat":
        return out.reshape(n, 2 * c, h, w_sp)     # contiguous view, free
    return out.reshape(n, c, h, w_sp)


# ---------------------------------------------------------------------------
# Pure-JAX reference of the same forward pass
# ---------------------------------------------------------------------------

def _reference(x, weight, bias, mode):
    n, c, h, w = x.shape
    y = (jnp.einsum("oc,ncs->nos", weight, x.reshape(n, c, h * w))
         + bias[None, :, None]).reshape(n, c, h, w)
    if mode == "cat":
        return jnp.concatenate([x, y], axis=1)
    if mode == "add":
        return x + y
    return x * y


if __name__ == "__main__":
    key = jax.random.PRNGKey(0)
    kx, kw, kb, kx2, kw2, kb2 = jax.random.split(key, 6)

    ok = True

    # Primary shapes from the module spec (HW divisible by 128).
    N, C, H, W = 2, 4, 16, 16
    x = jax.random.normal(kx, (N, C, H, W), dtype=jnp.float32)
    weight = jax.random.normal(kw, (C, C), dtype=jnp.float32) * 0.1
    bias = jax.random.normal(kb, (C,), dtype=jnp.float32) * 0.1
    for mode in ("cat", "add", "mul"):
        out = jax.block_until_ready(skip_connection(x, weight, bias, mode=mode))
        ref = _reference(x, weight, bias, mode)
        if not jnp.allclose(out, ref, atol=1e-5, rtol=1e-5):
            ok = False
            print(f"MISMATCH mode={mode}: "
                  f"max_err={float(jnp.max(jnp.abs(out - ref)))}")

    # Boundary-block path: HW not a multiple of 128 (masked edge block).
    N2, C2, H2, W2 = 2, 8, 12, 13
    x2 = jax.random.normal(kx2, (N2, C2, H2, W2), dtype=jnp.float32)
    weight2 = jax.random.normal(kw2, (C2, C2), dtype=jnp.float32) * 0.1
    bias2 = jax.random.normal(kb2, (C2,), dtype=jnp.float32) * 0.1
    out2 = jax.block_until_ready(skip_connection(x2, weight2, bias2, mode="cat"))
    ref2 = _reference(x2, weight2, bias2, "cat")
    if not jnp.allclose(out2, ref2, atol=1e-5, rtol=1e-5):
        ok = False
        print(f"MISMATCH boundary: "
              f"max_err={float(jnp.max(jnp.abs(out2 - ref2)))}")

    if ok:
        print("KERNEL_OK")
</pallas_src>

<mosaic_0001>
module attributes {stable_mosaic.version = 11 : i64} {
  func.func @_skip_kernel(%arg0: i32, %arg1: i32, %arg2: memref<1x4x256xf32, #tpu.memory_space<vmem>>, %arg3: memref<4x4xf32, #tpu.memory_space<vmem>>, %arg4: memref<4x1xf32, #tpu.memory_space<vmem>>, %arg5: memref<1x2x4x256xf32, #tpu.memory_space<vmem>>) attributes {dimension_semantics = [#tpu.dimension_semantics<parallel>, #tpu.dimension_semantics<parallel>], iteration_bounds = array<i64: 2, 1>, scalar_prefetch = 0 : i64, scratch_operands = 0 : i64, tpu.core_type = #tpu.core_type<tc>, window_params = [{transform_indices = @transform_0, window_bounds = array<i64: 1, 4, 256>}, {pipeline_mode = #tpu.pipeline_mode<synchronous>, transform_indices = @transform_1, window_bounds = array<i64: 4, 4>}, {pipeline_mode = #tpu.pipeline_mode<synchronous>, transform_indices = @transform_2, window_bounds = array<i64: 4, 1>}, {transform_indices = @transform_3, window_bounds = array<i64: 1, 2, 4, 256>}]} {
    %c0 = arith.constant 0 : index
    %c0_0 = arith.constant 0 : index
    %c0_1 = arith.constant 0 : index
    %0 = vector.load %arg2[%c0, %c0_0, %c0_1] : memref<1x4x256xf32, #tpu.memory_space<vmem>>, vector<1x4x256xf32>
    %1 = vector.shape_cast %0 : vector<1x4x256xf32> to vector<4x256xf32>
    %c0_2 = arith.constant 0 : index
    %c0_3 = arith.constant 0 : index
    %2 = vector.load %arg3[%c0_2, %c0_3] : memref<4x4xf32, #tpu.memory_space<vmem>>, vector<4x4xf32>
    %cst = arith.constant dense<0.000000e+00> : vector<4x256xf32>
    %3 = tpu.matmul %2, %1, %cst {dimension_numbers = #tpu.dot_dimension_numbers<[1], [0], [0], [1], [0, 0, 1, 1], [], []>} : vector<4x4xf32>, vector<4x256xf32>, vector<4x256xf32> -> vector<4x256xf32>
    %c0_4 = arith.constant 0 : index
    %c0_5 = arith.constant 0 : index
    %4 = vector.load %arg4[%c0_4, %c0_5] : memref<4x1xf32, #tpu.memory_space<vmem>>, vector<4x1xf32>
    %5 = vector.broadcast %4 : vector<4x1xf32> to vector<4x256xf32>
    %6 = arith.addf %3, %5 : vector<4x256xf32>
    %c0_6 = arith.constant 0 : index
    %c0_7 = arith.constant 0 : index
    %c0_8 = arith.constant 0 : index
    %c0_9 = arith.constant 0 : index
    %7 = vector.load %arg5[%c0_6, %c0_7, %c0_8, %c0_9] : memref<1x2x4x256xf32, #tpu.memory_space<vmem>>, vector<1x1x4x256xf32>
    %8 = vector.shape_cast %7 : vector<1x1x4x256xf32> to vector<4x256xf32>
    %9 = vector.shape_cast %1 : vector<4x256xf32> to vector<1x1x4x256xf32>
    tpu.vector_store %arg5[%c0_6, %c0_7, %c0_8, %c0_9], %9 {strides = array<i32>} : memref<1x2x4x256xf32, #tpu.memory_space<vmem>>, vector<1x1x4x256xf32>,
    %c0_10 = arith.constant 0 : index
    %c1 = arith.constant 1 : index
    %c0_11 = arith.constant 0 : index
    %c0_12 = arith.constant 0 : index
    %10 = vector.load %arg5[%c0_10, %c1, %c0_11, %c0_12] : memref<1x2x4x256xf32, #tpu.memory_space<vmem>>, vector<1x1x4x256xf32>
    %11 = vector.shape_cast %10 : vector<1x1x4x256xf32> to vector<4x256xf32>
    %12 = vector.shape_cast %6 : vector<4x256xf32> to vector<1x1x4x256xf32>
    tpu.vector_store %arg5[%c0_10, %c1, %c0_11, %c0_12], %12 {strides = array<i32>} : memref<1x2x4x256xf32, #tpu.memory_space<vmem>>, vector<1x1x4x256xf32>,
    return
  }
  func.func @transform_0(%arg0: i32, %arg1: i32) -> (i32, i32, i32) {
    %c0_i32 = arith.constant 0 : i32
    %c0_i32_0 = arith.constant 0 : i32
    return %arg0, %c0_i32, %arg1 : i32, i32, i32
  }
  func.func @transform_1(%arg0: i32, %arg1: i32) -> (i32, i32) {
    %c0_i32 = arith.constant 0 : i32
    %c0_i32_0 = arith.constant 0 : i32
    %c0_i32_1 = arith.constant 0 : i32
    return %c0_i32, %c0_i32_0 : i32, i32
  }
  func.func @transform_2(%arg0: i32, %arg1: i32) -> (i32, i32) {
    %c0_i32 = arith.constant 0 : i32
    %c0_i32_0 = arith.constant 0 : i32
    %c0_i32_1 = arith.constant 0 : i32
    return %c0_i32, %c0_i32_0 : i32, i32
  }
  func.func @transform_3(%arg0: i32, %arg1: i32) -> (i32, i32, i32, i32) {
    %c0_i32 = arith.constant 0 : i32
    %c0_i32_0 = arith.constant 0 : i32
    %c0_i32_1 = arith.constant 0 : i32
    return %arg0, %c0_i32, %c0_i32_0, %arg1 : i32, i32, i32, i32
  }
}

</mosaic_0001>

<bundles_post_ra>
// kernel: tpu_custom_call.1
= control target key start
LH: loop header
LB: loop body
LE: loop exit
PB: predicated region body
PF: predicated region fallthrough
CT: control target
= control target key end

     0   :  { %8 = vsyncpa [#allocation3], 0  ;;  %s817_s0 = inlined_call_operand.hbm [shape: f32[2,4,256], index: 0, kind: input, shape index: {}]   ;;  %s818_s1 = inlined_call_operand.vmem [shape: f32[4,4], index: 1, kind: input, shape index: {}]   ;;  %s819_s2 = inlined_call_operand.vmem [shape: f32[4,1], index: 2, kind: input, shape index: {}]   ;;  %s820_s3 = inlined_call_operand.hbm [shape: f32[2,2,4,256], index: 3, kind: output, shape index: {}]  }
   0x1   :  { %10 = vsyncpa [#allocation3 + $0x1], 0 }
   0x2   :  { %11 = vsyncpa [#allocation4], 0 }
   0x3   :  { %13 = vsyncpa [#allocation4 + $0x1], 0  ;;  %s636_s12 = smov 0   ;;  %s638_s13 = smov 0  }
   0x4   :  { %s640_s14 = smov 0   ;;  %s642_s15 = smov 0  }
   0x5   :  { %s644_s16 = smov 0   ;;  %s646_s17 = smov 0  }
   0x6 LB: > { %s407_s18 = sadd.s32 4294967295, %s608_s17   ;;  %s408_s19 = sadd.s32 4294967294, %s608_s17   ;;  %s608_s17 = sphi %s646_s17, %s19_s17   ;;  %s604_s16 = sphi %s644_s16, %s836_s16   ;;  %s600_s15 = sphi %s642_s15, %s835_s15   ;;  %s596_s14 = sphi %s640_s14, %s834_s14   ;;  %s592_s13 = sphi %s638_s13, %s833_s13   ;;  %s588_s12 = sphi %s636_s12, %s832_s12  }
   0x7   : > { %s31_s20 = sadd.s32 1, %s604_s16  ;;  %s40_s21 = sadd.s32 1, %s596_s14 }
   0x8   : > { %p33_p0 = scmp.ge.s32.totalorder %s31_s20, 2  ;;  %p47_p1 = scmp.ne.s32.totalorder %s596_s14, %s592_s13 }
   0x9   : > { %p48_p2 = scmp.eq.s32.totalorder %s608_s17, 0  ;;  %p53_p3 = scmp.ne.s32.totalorder %s592_s13, %s588_s12 }
   0xa   : > { %s838_s20 = smov (%p33_p0, %s31_s20), 0  ;;  %p54_p5 = scmp.eq.s32.totalorder %s407_s18, 0 }
   0xb   : > { %p677_p4 = por %p48_p2, %p47_p1  ;;  %s35_s23 = ssub.s32 %s604_s16, %s838_s20 }
   0xc   : > { %p121_p6 = scmp.eq.s32.totalorder %s407_s18, 1  ;;  %p38_p7 = scmp.eq.s32.totalorder %s35_s23, 0 }
   0xd   : > { %p683_p8 = por %p54_p5, %p53_p3  ;;  %p127_p10 = scmp.eq.s32.totalorder %s408_s19, 1 }
   0xe   : > { %p687_p9 = por %p121_p6, %p47_p1  ;;  %p440_p13 = scmp.lt.s32.totalorder %s608_s17, 2 }
   0xf   : > { %s692_s26 = scalar_select %p38_p7, %s596_s14, %s40_s21  }
  0x10   : > { %s824_s25 = scalar_select %p687_p9, 1, 0 }
  0x11   : > { %p694_p11 = por %p127_p10, %p53_p3  ;;  %s153_s28 = sand.u32 1, %s596_s14  }
  0x12   : > { %s411_s29 = sshll.u32 %s153_s28, 3  ;;  %s426_s30 = sshll.u32 %s604_s16, 7 }
  0x13   : > { %s825_s27 = scalar_select %p694_p11, 1, 0 }
  0x14   : > { %s705_s6 = scalar_lea.hbm %s817_s0, %s426_s30  ;;  %s157_s7 = scalar_lea.vmem [#allocation2], %s411_s29 }
  0x15   : > { %s167_s8 = sshll.u32 %s157_s7, 4  ;;  %p711_p0 = pnand %p440_p13, %p677_p4  ;;  %s707_s8 = int_to_ptr.vmem [resolvable:$true] %s167_s8 }
  0x16   : > { %s154_s10 = scalar_lea.sflag [#allocation3], %s153_s28  ;;  %s496_s11 = scalar_lea.hbm %s705_s6, 128 }
  0x17   : > { %p497_p3 = scmp.ne.s32.totalorder %s705_s6, %s496_s11  ;;  %p498_p5 = pneg %p711_p0 }
  0x18   : > { %s501_s21 = scalar_lea.hbm %s817_s0, 256  ;;  %p502_p4 = scmp.lt.u32.totalorder %s705_s6, %s817_s0 }
  0x19   : > { %p499_p6 = pnand %p498_p5, %p497_p3  ;;  %p503_p10 = scmp.lt.u32.totalorder %s501_s21, %s496_s11 }
  0x1a   : > { %p505_p12 = scmp.lt.u32.totalorder %s496_s11, %s705_s6 }
  0x1b   : > { %p500_p7 = pneg %p499_p6  ;;  %p504_p13 = por %p503_p10, %p502_p4 }
  0x1d   : > { %p506_p1 = por %p505_p12, %p504_p13 }
  0x1f   : > { %p507_p2 = pnand %p506_p1, %p500_p7 }
  0x21   : > { %510 = shalt.err (!%p507_p2)
}
  0x22   : > { %s511_s28 = scalar_lea.vmem %s707_s8, 128  ;;  %s610_s29 = smov [#allocation2]  }
  0x23   : > { %p512_p3 = scmp.ne.s32.totalorder %s707_s8, %s511_s28  ;;  %s516_s30 = sshll.u32 %s610_s29, 4  ;;  %s517_s30 = int_to_ptr.vmem [resolvable:$false] %s516_s30 }
  0x24   : > { %s518_s4 = scalar_lea.vmem %s517_s30, 256  ;;  %p519_p9 = scmp.lt.s32.totalorder %s707_s8, %s517_s30 }
  0x25   : > { %p514_p6 = pnand %p512_p3, %p498_p5  ;;  %p520_p4 = scmp.lt.s32.totalorder %s518_s4, %s511_s28 }
  0x27   : > { %p515_p11 = pneg %p514_p6  ;;  %p521_p10 = por %p520_p4, %p519_p9 }
  0x29   : > { %p522_p12 = pnand %p521_p10, %p515_p11 }
  0x2b   : > { %525 = shalt.err (!%p522_p12)
}
  0x2c   : > { %435 = dma.hbm_to_vmem [thread:$0]  (!%p711_p0), %s705_s6, 128, %s707_s8, %s154_s10  }
  0x2d   : > { %p827_p1 = scmp.lt.s32.totalorder %s608_s17, 3  ;;  %p828_p2 = scmp.ge.s32.totalorder %s608_s17, 1 }
  0x2f   : > { %p173_p5 = pnand %p828_p2, %p827_p1 }
  0x30   : > { %s747_s5 = sand.u32 (!%p173_p5), 1, %s592_s13  }
  0x31   : > { %176 = sbr.rel (%p173_p5) target bundleno = 294 (0x126), region = 32  ;;  %s415_s7 = sshll.u32 (!%p173_p5), %s747_s5, 3 }
  0x32   : > { %s179_s11 = scalar_lea.sflag (!%p173_p5), [#allocation3], %s747_s5  ;;  %s182_s18 = scalar_lea.vmem (!%p173_p5), [#allocation2], %s415_s7 }
  0x38   : > { %579 = dma.done.wait (%p683_p8), %s179_s11, 128  }
  0x39   : > { %581 = vsyncadd (%p683_p8), %s179_s11, 4294967168  ;;  %v611_v0 = vmov 0.0   ;;  %v612_v1 = vmov 0   ;;  %s416_s6 = sshll.u32 %s747_s5, 4  ;;  %v207_v2 = vld [vmem:[%s182_s18] sm:$0xff]  ;;  %vm221_vm0 = vcmask 1043456  }
  0x3a   : > { %290 = vmatprep.mubr.f32.mxu0 %v611_v0  ;;  %494 = vset.pattern.permute.xlu0 %v612_v1  ;;  %v209_v3 = vld [vmem:[%s819_s2] sm:$0xf]  ;;  %v216_v4 = vcombine.high %v207_v2, %v207_v2  ;;  %s204_s10 = scalar_lea.vmem [#allocation5], %s416_s6  ;;  %vm217_vm1 = vcmask 31744   ;;  %s427_s22 = sshll.u32 %s600_s15, 8 }
  0x3b   : > { %297 = vst [vmem:[%s204_s10] sm:$0xff] %v207_v2  ;;  %212 = vperm.xlu0 %494, %v209_v3   ;;  %v208_v5 = vld [vmem:[%s818_s1] sm:$0xf]  ;;  %s320_s21 = sshll.u32 %s204_s10, 4  ;;  %s768_s29 = scalar_lea.hbm %s820_s3, %s427_s22  ;;  %s763_s21 = int_to_ptr.vmem [resolvable:$true] %s320_s21 }
  0x3c   : > { %417 = vmatprep.subr.msk.mxu0 %vm221_vm0, %v216_v4  ;;  %s305_s30 = scalar_lea.sflag [#allocation4], %s747_s5  ;;  %s526_s4 = scalar_lea.vmem %s763_s21, 256 }
  0x3d   : > { %418 = vmatpush1.msk.msra.mxu0 %vm221_vm0, %v207_v2  ;;  %p527_p8 = scmp.ne.s32.totalorder %s763_s21, %s526_s4  ;;  %p829_p9 = scmp.ne.s32.totalorder %s824_s25, 0 }
  0x3e   : > { %419 = vmatmul.mubr.msk.f32.vlgmr.msra.gmra.mrb[0].mxu0 %vm217_vm1, %v208_v5  ;;  %s613_s15 = smov [#allocation5]  }
  0x3f   : > { %p528_p11 = pnand %p527_p8, %p829_p9  ;;  %s530_s7 = sshll.u32 %s613_s15, 4  ;;  %s531_s7 = int_to_ptr.vmem [resolvable:$false] %s530_s7 }
  0x40   : > { %s532_s11 = scalar_lea.vmem %s531_s7, 512  ;;  %p533_p7 = scmp.lt.s32.totalorder %s763_s21, %s531_s7 }
  0x41   : > { %p529_p0 = pneg %p528_p11  ;;  %p534_p13 = scmp.lt.s32.totalorder %s532_s11, %s526_s4 }
  0x43   : > { %p535_p3 = por %p534_p13, %p533_p7 }
  0x45   : > { %p536_p6 = pnand %p535_p3, %p529_p0 }
  0xba   : > { %v213_v6 = vpop.permute.xlu0 %212 }
 0x111   : > { %v292_v7 = vpop.f32.mrb[0].mxu0 }
 0x112   : > { %v293_v8 = vadd.f32 %v292_v7, %v213_v6  ;;  %v294_v9 = vpop.f32.mrb[1].mxu0 }
 0x113   : > { %v295_v10 = vadd.f32 %v294_v9, %v213_v6 }
 0x115   : > { %v300_v11 = vcombine.low %v293_v8, %v295_v10 }
 0x117   : > { %420 = vst [vmem:[%s204_s10 + $0x8] sm:$0xff] %v300_v11 }
 0x118   : > { %539 = shalt.err (!%p536_p6)
}
 0x119   : > { %s540_s18 = scalar_lea.hbm %s768_s29, 256  ;;  %s544_s9 = scalar_lea.hbm %s820_s3, 512 }
 0x11a   : > { %p541_p4 = scmp.ne.s32.totalorder %s768_s29, %s540_s18  ;;  %p545_p1 = scmp.lt.u32.totalorder %s768_s29, %s820_s3 }
 0x11b   : > { %p546_p2 = scmp.lt.u32.totalorder %s544_s9, %s540_s18  ;;  %p548_p8 = scmp.lt.u32.totalorder %s540_s18, %s768_s29 }
 0x11c   : > { %p542_p10 = pnand %p541_p4, %p829_p9 }
 0x11d   : > { %p547_p5 = por %p546_p2, %p545_p1 }
 0x11e   : > { %p543_p12 = pneg %p542_p10 }
 0x11f   : > { %p549_p11 = por %p548_p8, %p547_p5 }
 0x121   : > { %p550_p0 = pnand %p549_p11, %p543_p12 }
 0x123   : > { %553 = shalt.err (!%p550_p0)
}
 0x124   : > { %s614_s24 = smov 128   ;;  %s615_s22 = smov 8  }
 0x125   : > { %430 = dma.vmem_to_hbm [thread:$0]  (%p829_p9), %s763_s21, 256, %s768_s29, %s305_s30, %s614_s24, %s614_s24, %s615_s22  }
 0x126 PF: > { %s335_s23 = sand.u32 1, %s588_s12   ;;  %p830_p7 = scmp.ne.s32.totalorder %s825_s27, 0 }
 0x127   : > { %p831_p13 = scmp.ge.s32.totalorder %s608_s17, 2  ;;  %s336_s28 = scalar_lea.sflag [#allocation4], %s335_s23 }
 0x129   : > { %p437_p3 = pnand %p831_p13, %p830_p7 }
 0x12b   : > { %583 = dma.done.wait (!%p437_p3), %s336_s28, 256  }
 0x12c   : > { %585 = vsyncadd (!%p437_p3), %s336_s28, 4294967040  ;;  %s19_s17 = sadd.s32 1, %s608_s17   ;;  %s832_s12 = smov %s592_s13 }
 0x12d   : > { %p16_p6 = scmp.ge.s32.totalorder %s19_s17, 4   ;;  %s833_s13 = smov %s596_s14 }
 0x12e   : > { %s834_s14 = smov %s692_s26  ;;  %s835_s15 = smov %s604_s16 }
 0x12f   : > { %s836_s16 = smov %s838_s20  ;;  %18 = sbr.rel (!%p16_p6) target bundleno = 6 (0x6), region = 78 }
 0x136   :  { %341 = vsyncpa [#allocation3], 1 }
 0x137   :  { %343 = vsyncpa [#allocation3 + $0x1], 1 }
 0x138   :  { %344 = vsyncpa [#allocation4], 1 }
 0x139   :  { %346 = vsyncpa [#allocation4 + $0x1], 1 }

</bundles_post_ra>
